<compile_context>
chip_gen: v7x
topology: tpu7x:2x2x1
jax: 0.10.0
libtpu: 0.0.40
codegen_flags: <defaults>
</compile_context>

<pallas_src>
import jax
import jax.numpy as jnp
from jax import lax
from jax.experimental import pallas as pl
from jax.experimental.pallas import tpu as pltpu

_LANE = 128       # lane width / feature-dim padding multiple
_MIN_TILE = 128   # minimum row tile (MXU-friendly, satisfies the (8,128) rule)


def _round_up(x, m):
    return ((x + m - 1) // m) * m


def _vmem_budget_bytes():
    # Default budget sized against the most constrained chip (v7x: 64 MiB).
    budget = 48 * 1024 * 1024
    try:
        budget = int(pltpu.get_tpu_info().vmem_capacity_bytes) * 3 // 4
    except Exception:
        pass
    return budget


def _select_tiles(n, d_pad, vmem_budget):
    """Pick (TM, TN, n_pad) so double-buffered blocks fit the VMEM budget."""
    tile = _MIN_TILE
    for cand in (512, 256):
        # 2x double-buffered (xi + xj) feature blocks
        # + gram/dist2/pos/neg working set + lane-dense accumulators (rough UB).
        need = (2 * 2 * cand * d_pad * 4
                + 4 * cand * cand * 4
                + 2 * cand * _LANE * 4)
        if need <= vmem_budget:
            tile = cand
            break
    n_pad128 = _round_up(max(n, 1), _MIN_TILE)
    tn = min(tile, n_pad128)
    tm = tn
    # Keep >= 2 anchor row-blocks when the batch allows it so the "parallel"
    # i axis can shard across v7x's two TensorCores.
    while tm > _MIN_TILE and _round_up(n, tn) // tm < 2:
        tm //= 2
    n_pad = _round_up(max(n, 1), tn)   # tm | tn | n_pad (powers of two * 128)
    return tm, tn, n_pad


def _triplet_kernel(margin_ref, xi_ref, xj_ref, sqi_ref, sqj_ref, ti_ref,
                    tj_ref, out_ref, ap_acc, an_acc):
    j = pl.program_id(1)

    @pl.when(j == 0)
    def _():
        ap_acc[...] = jnp.full(ap_acc.shape, -jnp.inf, dtype=ap_acc.dtype)
        an_acc[...] = jnp.full(an_acc.shape, jnp.inf, dtype=an_acc.dtype)

    # Squared pairwise distances for this (TM, TN) tile:
    #   ||x_i||^2 + ||x_j||^2 - 2 <x_i, x_j>
    # dot_general contracts the feature dim of BOTH operands (no transpose).
    gram = lax.dot_general(
        xi_ref[...], xj_ref[...],
        dimension_numbers=(((1,), (1,)), ((), ())),
        preferred_element_type=jnp.float32)                   # (TM, TN)
    dist2 = sqi_ref[...] + sqj_ref[...] - 2.0 * gram          # (TM, TN)

    # Padded candidate columns carry a sentinel label (never equal to a real
    # one) and ||x_j||^2 = +inf, so no in-kernel validity mask is needed.
    same = ti_ref[...] == tj_ref[...]                          # (TM, TN)
    pos = jnp.where(same, dist2, -jnp.inf)
    neg = jnp.where(same, jnp.inf, dist2)

    # Lane-dense accumulators: fold TN/128 lane groups element-wise (VPU work,
    # hidden under the MXU); the single cross-lane reduce happens only in the
    # finalize block below.
    ap = ap_acc[...]
    an = an_acc[...]
    for g in range(dist2.shape[1] // _LANE):
        sl = slice(g * _LANE, (g + 1) * _LANE)
        ap = jnp.maximum(ap, pos[:, sl])
        an = jnp.minimum(an, neg[:, sl])
    ap_acc[...] = ap
    an_acc[...] = an

    @pl.when(j == pl.num_programs(1) - 1)
    def _():
        # Mining happened on SQUARED distances; clamp+sqrt are monotone, so
        # applying them to the (TM, 1) winners matches the reference exactly.
        ap_row = jnp.max(ap_acc[...], axis=1, keepdims=True)   # (TM, 1)
        an_row = jnp.min(an_acc[...], axis=1, keepdims=True)   # (TM, 1)
        dist_ap = jnp.sqrt(jnp.maximum(ap_row, 1e-12))
        dist_an = jnp.sqrt(jnp.maximum(an_row, 1e-12))
        margin = margin_ref[0, 0]
        # MarginRankingLoss(y=1): max(0, dist_ap - dist_an + margin)
        out_ref[...] = jnp.maximum(dist_ap - dist_an + margin, 0.0)


def triplet_loss_pallas(inputs, targets, margin=0.3):
    """inputs: (n, d) float, targets: (n,) int -> scalar float32 loss."""
    n, d = inputs.shape
    d_pad = _round_up(d, _LANE)
    vmem_budget = _vmem_budget_bytes()
    tm, tn, n_pad = _select_tiles(n, d_pad, vmem_budget)

    x = jnp.pad(inputs.astype(jnp.float32), ((0, n_pad - n), (0, d_pad - d)))
    sq = jnp.sum(x * x, axis=1)                          # (n_pad,), 0 in pad

    col_valid = jnp.arange(n_pad) < n
    # Candidate-side padding: +inf norm + sentinel label => padded columns can
    # never win hard-positive / hard-negative mining (no in-kernel mask).
    sq_row = jnp.where(col_valid, sq, jnp.inf).reshape(1, n_pad)
    sq_col = sq.reshape(n_pad, 1)

    t = targets.astype(jnp.int32)
    sentinel = jnp.min(t) - 1
    t_pad = jnp.where(col_valid, jnp.pad(t, (0, n_pad - n)), sentinel)
    t_col = t_pad.reshape(n_pad, 1)
    t_row = t_pad.reshape(1, n_pad)

    margin_arr = jnp.full((1, 1), margin, dtype=jnp.float32)

    grid = (n_pad // tm, n_pad // tn)

    per_sample = pl.pallas_call(
        _triplet_kernel,
        out_shape=jax.ShapeDtypeStruct((n_pad, 1), jnp.float32),
        grid=grid,
        in_specs=[
            pl.BlockSpec((1, 1), lambda i, j: (0, 0),
                         memory_space=pltpu.SMEM),               # margin scalar
            pl.BlockSpec((tm, d_pad), lambda i, j: (i, 0)),      # anchors x_i
            pl.BlockSpec((tn, d_pad), lambda i, j: (j, 0)),      # candidates x_j
            pl.BlockSpec((tm, 1), lambda i, j: (i, 0)),          # ||x_i||^2
            pl.BlockSpec((1, tn), lambda i, j: (0, j)),          # ||x_j||^2 (lane-major)
            pl.BlockSpec((tm, 1), lambda i, j: (i, 0)),          # labels_i
            pl.BlockSpec((1, tn), lambda i, j: (0, j)),          # labels_j
        ],
        out_specs=pl.BlockSpec((tm, 1), lambda i, j: (i, 0)),    # per-row hinge
        scratch_shapes=[pltpu.VMEM((tm, _LANE), jnp.float32),    # lane-dense running max(dist2)
                        pltpu.VMEM((tm, _LANE), jnp.float32)],   # lane-dense running min(dist2)
        compiler_params=pltpu.CompilerParams(
            dimension_semantics=("parallel", "arbitrary"),
            vmem_limit_bytes=vmem_budget),
        cost_estimate=pl.CostEstimate(
            flops=2 * n_pad * n_pad * d_pad + 12 * n_pad * n_pad,
            transcendentals=2 * n_pad,
            # xi streamed once; xj re-streamed once per anchor row-block.
            bytes_accessed=4 * (n_pad * d_pad
                                + (n_pad // tm) * n_pad * d_pad
                                + 6 * n_pad)),
    )(margin_arr, x, x, sq_col, sq_row, t_col, t_row)

    # Padded rows are excluded from the mean (unbiased).
    return jnp.mean(per_sample[:n, 0])


def triplet_loss_ref(inputs, targets, margin=0.3):
    """Pure-JAX reference mirroring the PyTorch module (mutual_flag=False)."""
    x = inputs.astype(jnp.float32)
    sq = jnp.sum(x * x, axis=1, keepdims=True)
    dist2 = sq + sq.T - 2.0 * (x @ x.T)
    dist = jnp.sqrt(jnp.maximum(dist2, 1e-12))
    mask = targets[:, None] == targets[None, :]
    dist_ap = jnp.max(jnp.where(mask, dist, -jnp.inf), axis=1)
    dist_an = jnp.min(jnp.where(mask, jnp.inf, dist), axis=1)
    return jnp.mean(jnp.maximum(dist_ap - dist_an + margin, 0.0))


if __name__ == "__main__":
    key = jax.random.PRNGKey(0)
    n, d = 8, 32                                   # batch=8 samples, feat_dim=32
    inputs = jax.random.normal(key, (n, d), dtype=jnp.float32)
    # 4 classes, 2 samples each -> every row has a positive and a negative.
    targets = jnp.array([0, 0, 1, 1, 2, 2, 3, 3], dtype=jnp.int32)

    loss = triplet_loss_pallas(inputs, targets, margin=0.3)
    loss = jax.block_until_ready(loss)

    ref = triplet_loss_ref(inputs, targets, margin=0.3)
    assert jnp.allclose(loss, ref, atol=1e-5, rtol=1e-5), (loss, ref)
    print("KERNEL_OK")
</pallas_src>

<mosaic_0001>
module attributes {stable_mosaic.version = 11 : i64} {
  func.func @_triplet_kernel(%arg0: i32, %arg1: i32, %arg2: memref<1x1xf32, #tpu.memory_space<smem>>, %arg3: memref<128x128xf32, #tpu.memory_space<vmem>>, %arg4: memref<128x128xf32, #tpu.memory_space<vmem>>, %arg5: memref<128x1xf32, #tpu.memory_space<vmem>>, %arg6: memref<1x128xf32, #tpu.memory_space<vmem>>, %arg7: memref<128x1xi32, #tpu.memory_space<vmem>>, %arg8: memref<1x128xi32, #tpu.memory_space<vmem>>, %arg9: memref<128x1xf32, #tpu.memory_space<vmem>>, %arg10: memref<128x128xf32, #tpu.memory_space<vmem>>, %arg11: memref<128x128xf32, #tpu.memory_space<vmem>>) attributes {dimension_semantics = [#tpu.dimension_semantics<parallel>, #tpu.dimension_semantics<arbitrary>], iteration_bounds = array<i64: 1, 1>, scalar_prefetch = 0 : i64, scratch_operands = 2 : i64, tpu.core_type = #tpu.core_type<tc>, window_params = [{transform_indices = @transform_0, window_bounds = array<i64: 1, 1>}, {transform_indices = @transform_1, window_bounds = array<i64: 128, 128>}, {transform_indices = @transform_2, window_bounds = array<i64: 128, 128>}, {transform_indices = @transform_3, window_bounds = array<i64: 128, 1>}, {transform_indices = @transform_4, window_bounds = array<i64: 1, 128>}, {transform_indices = @transform_5, window_bounds = array<i64: 128, 1>}, {transform_indices = @transform_6, window_bounds = array<i64: 1, 128>}, {transform_indices = @transform_7, window_bounds = array<i64: 128, 1>}]} {
    %c0_i32 = arith.constant 0 : i32
    %0 = arith.cmpi eq, %arg1, %c0_i32 : i32
    %1 = arith.extui %0 : i1 to i32
    %c0_i32_0 = arith.constant 0 : i32
    %2 = arith.cmpi ne, %1, %c0_i32_0 : i32
    scf.if %2 {
      %cst_25 = arith.constant 0xFF800000 : f32
      %32 = vector.broadcast %cst_25 : f32 to vector<128x128xf32>
      %c0_26 = arith.constant 0 : index
      %c0_27 = arith.constant 0 : index
      %33 = vector.load %arg10[%c0_26, %c0_27] : memref<128x128xf32, #tpu.memory_space<vmem>>, vector<128x128xf32>
      tpu.vector_store %arg10[%c0_26, %c0_27], %32 {strides = array<i32>} : memref<128x128xf32, #tpu.memory_space<vmem>>, vector<128x128xf32>,
      %cst_28 = arith.constant 0x7F800000 : f32
      %34 = vector.broadcast %cst_28 : f32 to vector<128x128xf32>
      %c0_29 = arith.constant 0 : index
      %c0_30 = arith.constant 0 : index
      %35 = vector.load %arg11[%c0_29, %c0_30] : memref<128x128xf32, #tpu.memory_space<vmem>>, vector<128x128xf32>
      tpu.vector_store %arg11[%c0_29, %c0_30], %34 {strides = array<i32>} : memref<128x128xf32, #tpu.memory_space<vmem>>, vector<128x128xf32>,
    } else {
    }
    %c0 = arith.constant 0 : index
    %c0_1 = arith.constant 0 : index
    %3 = vector.load %arg3[%c0, %c0_1] : memref<128x128xf32, #tpu.memory_space<vmem>>, vector<128x128xf32>
    %c0_2 = arith.constant 0 : index
    %c0_3 = arith.constant 0 : index
    %4 = vector.load %arg4[%c0_2, %c0_3] : memref<128x128xf32, #tpu.memory_space<vmem>>, vector<128x128xf32>
    %cst = arith.constant dense<0.000000e+00> : vector<128x128xf32>
    %5 = tpu.matmul %3, %4, %cst {dimension_numbers = #tpu.dot_dimension_numbers<[1], [1], [0], [0], [0, 0, 1, 0], [], []>} : vector<128x128xf32>, vector<128x128xf32>, vector<128x128xf32> -> vector<128x128xf32>
    %c0_4 = arith.constant 0 : index
    %c0_5 = arith.constant 0 : index
    %6 = vector.load %arg5[%c0_4, %c0_5] : memref<128x1xf32, #tpu.memory_space<vmem>>, vector<128x1xf32>
    %c0_6 = arith.constant 0 : index
    %c0_7 = arith.constant 0 : index
    %7 = vector.load %arg6[%c0_6, %c0_7] : memref<1x128xf32, #tpu.memory_space<vmem>>, vector<1x128xf32>
    %8 = vector.broadcast %6 : vector<128x1xf32> to vector<128x128xf32>
    %9 = vector.broadcast %7 : vector<1x128xf32> to vector<128x128xf32>
    %10 = arith.addf %8, %9 : vector<128x128xf32>
    %cst_8 = arith.constant 2.000000e+00 : f32
    %11 = vector.broadcast %cst_8 : f32 to vector<128x128xf32>
    %12 = arith.mulf %11, %5 : vector<128x128xf32>
    %13 = arith.subf %10, %12 : vector<128x128xf32>
    %c0_9 = arith.constant 0 : index
    %c0_10 = arith.constant 0 : index
    %14 = vector.load %arg7[%c0_9, %c0_10] : memref<128x1xi32, #tpu.memory_space<vmem>>, vector<128x1xi32>
    %c0_11 = arith.constant 0 : index
    %c0_12 = arith.constant 0 : index
    %15 = vector.load %arg8[%c0_11, %c0_12] : memref<1x128xi32, #tpu.memory_space<vmem>>, vector<1x128xi32>
    %16 = vector.broadcast %14 : vector<128x1xi32> to vector<128x128xi32>
    %17 = vector.broadcast %15 : vector<1x128xi32> to vector<128x128xi32>
    %18 = arith.cmpi eq, %16, %17 : vector<128x128xi32>
    %cst_13 = arith.constant 0xFF800000 : f32
    %19 = vector.broadcast %cst_13 : f32 to vector<128x128xf32>
    %20 = arith.select %18, %13, %19 : vector<128x128xi1>, vector<128x128xf32>
    %cst_14 = arith.constant 0x7F800000 : f32
    %21 = vector.broadcast %cst_14 : f32 to vector<128x128xf32>
    %22 = arith.select %18, %21, %13 : vector<128x128xi1>, vector<128x128xf32>
    %c0_15 = arith.constant 0 : index
    %c0_16 = arith.constant 0 : index
    %23 = vector.load %arg10[%c0_15, %c0_16] : memref<128x128xf32, #tpu.memory_space<vmem>>, vector<128x128xf32>
    %c0_17 = arith.constant 0 : index
    %c0_18 = arith.constant 0 : index
    %24 = vector.load %arg11[%c0_17, %c0_18] : memref<128x128xf32, #tpu.memory_space<vmem>>, vector<128x128xf32>
    %25 = arith.maximumf %23, %20 : vector<128x128xf32>
    %26 = arith.minimumf %24, %22 : vector<128x128xf32>
    %c0_19 = arith.constant 0 : index
    %c0_20 = arith.constant 0 : index
    %27 = vector.load %arg10[%c0_19, %c0_20] : memref<128x128xf32, #tpu.memory_space<vmem>>, vector<128x128xf32>
    tpu.vector_store %arg10[%c0_19, %c0_20], %25 {strides = array<i32>} : memref<128x128xf32, #tpu.memory_space<vmem>>, vector<128x128xf32>,
    %c0_21 = arith.constant 0 : index
    %c0_22 = arith.constant 0 : index
    %28 = vector.load %arg11[%c0_21, %c0_22] : memref<128x128xf32, #tpu.memory_space<vmem>>, vector<128x128xf32>
    tpu.vector_store %arg11[%c0_21, %c0_22], %26 {strides = array<i32>} : memref<128x128xf32, #tpu.memory_space<vmem>>, vector<128x128xf32>,
    %c0_i32_23 = arith.constant 0 : i32
    %29 = arith.cmpi eq, %arg1, %c0_i32_23 : i32
    %30 = arith.extui %29 : i1 to i32
    %c0_i32_24 = arith.constant 0 : i32
    %31 = arith.cmpi ne, %30, %c0_i32_24 : i32
    scf.if %31 {
      %c0_25 = arith.constant 0 : index
      %c0_26 = arith.constant 0 : index
      %32 = vector.load %arg10[%c0_25, %c0_26] : memref<128x128xf32, #tpu.memory_space<vmem>>, vector<128x128xf32>
      %cst_27 = arith.constant dense<0xFF800000> : vector<128xf32>
      %33 = vector.multi_reduction <maximumf>, %32, %cst_27 [1] : vector<128x128xf32> to vector<128xf32>
      %34 = vector.shape_cast %33 : vector<128xf32> to vector<128x1xf32>
      %c0_28 = arith.constant 0 : index
      %c0_29 = arith.constant 0 : index
      %35 = vector.load %arg11[%c0_28, %c0_29] : memref<128x128xf32, #tpu.memory_space<vmem>>, vector<128x128xf32>
      %cst_30 = arith.constant dense<0x7F800000> : vector<128xf32>
      %36 = vector.multi_reduction <minimumf>, %35, %cst_30 [1] : vector<128x128xf32> to vector<128xf32>
      %37 = vector.shape_cast %36 : vector<128xf32> to vector<128x1xf32>
      %cst_31 = arith.constant 9.99999996E-13 : f32
      %38 = vector.broadcast %cst_31 : f32 to vector<128x1xf32>
      %39 = arith.maximumf %34, %38 : vector<128x1xf32>
      %40 = math.sqrt %39 : vector<128x1xf32>
      %cst_32 = arith.constant 9.99999996E-13 : f32
      %41 = vector.broadcast %cst_32 : f32 to vector<128x1xf32>
      %42 = arith.maximumf %37, %41 : vector<128x1xf32>
      %43 = math.sqrt %42 : vector<128x1xf32>
      %c0_33 = arith.constant 0 : index
      %c0_34 = arith.constant 0 : index
      %44 = memref.load %arg2[%c0_33, %c0_34] : memref<1x1xf32, #tpu.memory_space<smem>>
      %45 = arith.subf %40, %43 : vector<128x1xf32>
      %46 = vector.broadcast %44 : f32 to vector<128x1xf32>
      %47 = arith.addf %45, %46 : vector<128x1xf32>
      %cst_35 = arith.constant 0.000000e+00 : f32
      %48 = vector.broadcast %cst_35 : f32 to vector<128x1xf32>
      %49 = arith.maximumf %47, %48 : vector<128x1xf32>
      %c0_36 = arith.constant 0 : index
      %c0_37 = arith.constant 0 : index
      %50 = vector.load %arg9[%c0_36, %c0_37] : memref<128x1xf32, #tpu.memory_space<vmem>>, vector<128x1xf32>
      tpu.vector_store %arg9[%c0_36, %c0_37], %49 {strides = array<i32>} : memref<128x1xf32, #tpu.memory_space<vmem>>, vector<128x1xf32>,
    } else {
    }
    return
  }
  func.func @transform_0(%arg0: i32, %arg1: i32) -> (i32, i32) {
    %c0_i32 = arith.constant 0 : i32
    %c0_i32_0 = arith.constant 0 : i32
    %c0_i32_1 = arith.constant 0 : i32
    return %c0_i32, %c0_i32_0 : i32, i32
  }
  func.func @transform_1(%arg0: i32, %arg1: i32) -> (i32, i32) {
    %c0_i32 = arith.constant 0 : i32
    %c0_i32_0 = arith.constant 0 : i32
    return %arg0, %c0_i32 : i32, i32
  }
  func.func @transform_2(%arg0: i32, %arg1: i32) -> (i32, i32) {
    %c0_i32 = arith.constant 0 : i32
    %c0_i32_0 = arith.constant 0 : i32
    return %arg1, %c0_i32 : i32, i32
  }
  func.func @transform_3(%arg0: i32, %arg1: i32) -> (i32, i32) {
    %c0_i32 = arith.constant 0 : i32
    %c0_i32_0 = arith.constant 0 : i32
    return %arg0, %c0_i32 : i32, i32
  }
  func.func @transform_4(%arg0: i32, %arg1: i32) -> (i32, i32) {
    %c0_i32 = arith.constant 0 : i32
    %c0_i32_0 = arith.constant 0 : i32
    return %c0_i32, %arg1 : i32, i32
  }
  func.func @transform_5(%arg0: i32, %arg1: i32) -> (i32, i32) {
    %c0_i32 = arith.constant 0 : i32
    %c0_i32_0 = arith.constant 0 : i32
    return %arg0, %c0_i32 : i32, i32
  }
  func.func @transform_6(%arg0: i32, %arg1: i32) -> (i32, i32) {
    %c0_i32 = arith.constant 0 : i32
    %c0_i32_0 = arith.constant 0 : i32
    return %c0_i32, %arg1 : i32, i32
  }
  func.func @transform_7(%arg0: i32, %arg1: i32) -> (i32, i32) {
    %c0_i32 = arith.constant 0 : i32
    %c0_i32_0 = arith.constant 0 : i32
    return %arg0, %c0_i32 : i32, i32
  }
}

</mosaic_0001>

<bundles_post_ra>
// kernel: tpu_custom_call.1
= control target key start
LH: loop header
LB: loop body
LE: loop exit
PB: predicated region body
PF: predicated region fallthrough
CT: control target
= control target key end

     0   :  { %v1235_v3 = vmov 0   ;;  %s2023_s2 = inlined_call_operand.vmem [shape: f32[128,128], index: 2, kind: input, shape index: {}]   ;;  %s2024_s3 = inlined_call_operand.vmem [shape: f32[128,1], index: 3, kind: input, shape index: {}]   ;;  %s2025_s1 = inlined_call_operand.vmem [shape: f32[128,128], index: 1, kind: input, shape index: {}]   ;;  %s2026_s5 = inlined_call_operand.vmem [shape: s32[128,1], index: 5, kind: input, shape index: {}]   ;;  %s2027_s4 = inlined_call_operand.vmem [shape: f32[1,128], index: 4, kind: input, shape index: {}]   ;;  %s2028_s6 = inlined_call_operand.vmem [shape: s32[1,128], index: 6, kind: input, shape index: {}]   ;;  %s2029_s0 = inlined_call_operand.<no memory space> [shape: f32[1,1], index: 0, kind: input, shape index: {}]   ;;  %s2030_s7 = inlined_call_operand.vmem [shape: f32[128,1], index: 7, kind: output, shape index: {}]  }
   0x1   :  { %v79_v0 = vld [vmem:[%s2023_s2] sm:$0xff]  ;;  %v80_v1 = vld [vmem:[%s2023_s2 + $0x8] sm:$0xff]  ;;  %v81_v2 = vld [vmem:[%s2023_s2 + $0x10] sm:$0xff]  ;;  %1170 = vset.pattern.permute.xlu1 %v1235_v3  ;;  %1169 = vset.pattern.permute.xlu0 %v1235_v3 }
   0x2   :  { %v1120_v4 = vpack.c.bf16 %v80_v1, %v79_v0  ;;  %v82_v5 = vld [vmem:[%s2023_s2 + $0x18] sm:$0xff]  ;;  %v242_v7 = vld [vmem:[%s2024_s3 + $0x10] sm:$0xff]  ;;  %v83_v8 = vld [vmem:[%s2023_s2 + $0x20] sm:$0xff] }
   0x3   :  { %v1124_v6 = vpack.c.bf16 %v82_v5, %v81_v2  ;;  %v84_v9 = vld [vmem:[%s2023_s2 + $0x28] sm:$0xff]  ;;  %269 = vperm.xlu1 %1170, %v242_v7   ;;  %v240_v10 = vld [vmem:[%s2024_s3] sm:$0xff]  ;;  %v243_v11 = vld [vmem:[%s2024_s3 + $0x18] sm:$0xff] }
   0x4   :  { %1121 = vmatprep.subr.bf16.mxu0 %v1120_v4  ;;  %1152 = vmatprep.subr.bf16.mxu1 %v1120_v4  ;;  %v241_v12 = vld [vmem:[%s2024_s3 + $0x8] sm:$0xff]  ;;  %v63_v13 = vld [vmem:[%s2025_s1] sm:$0xff]  ;;  %v1128_v15 = vpack.c.bf16 %v84_v9, %v83_v8  ;;  %v85_v18 = vld [vmem:[%s2023_s2 + $0x30] sm:$0xff] }
   0x5   :  { %1123 = vmatpush3.bf16.xpose.msra.mxu0 %v1120_v4  ;;  %1160 = vmatpush3.bf16.xpose.msra.mxu1 %v1120_v4  ;;  %v71_v14 = vld [vmem:[%s2025_s1 + $0x40] sm:$0xff]  ;;  %v245_v16 = vld [vmem:[%s2024_s3 + $0x28] sm:$0xff]  ;;  %v86_v19 = vld [vmem:[%s2023_s2 + $0x38] sm:$0xff] }
   0x6   :  { %1125 = vmatprep.subr.bf16.mxu0 %v1124_v6  ;;  %1153 = vmatprep.subr.bf16.mxu1 %v1124_v6  ;;  %v244_v17 = vld [vmem:[%s2024_s3 + $0x20] sm:$0xff]  ;;  %v247_v20 = vld [vmem:[%s2024_s3 + $0x38] sm:$0xff]  ;;  %v246_v21 = vld [vmem:[%s2024_s3 + $0x30] sm:$0xff]  ;;  %v1132_v22 = vpack.c.bf16 %v86_v19, %v85_v18 }
   0x7   :  { %259 = vperm.xlu0 %1169, %v240_v10   ;;  %1096 = vmatprep.mubr.f32.mxu0 %v63_v13  ;;  %v249_v23 = vld [vmem:[%s2024_s3 + $0x48] sm:$0xff]  ;;  %v248_v24 = vld [vmem:[%s2024_s3 + $0x40] sm:$0xff]  ;;  %v251_v27 = vld [vmem:[%s2024_s3 + $0x58] sm:$0xff] }
   0x8   :  { %1108 = vmatprep.mubr.f32.mxu1 %v71_v14  ;;  %274 = vperm.xlu1 %1170, %v243_v11   ;;  %v87_v25 = vld [vmem:[%s2023_s2 + $0x40] sm:$0xff]  ;;  %v88_v26 = vld [vmem:[%s2023_s2 + $0x48] sm:$0xff]  ;;  %v250_v28 = vld [vmem:[%s2024_s3 + $0x50] sm:$0xff] }
   0x9   :  { %v1136_v29 = vpack.c.bf16 %v88_v26, %v87_v25  ;;  %v253_v30 = vld [vmem:[%s2024_s3 + $0x68] sm:$0xff]  ;;  %v252_v31 = vld [vmem:[%s2024_s3 + $0x60] sm:$0xff]  ;;  %v89_v32 = vld [vmem:[%s2023_s2 + $0x50] sm:$0xff] }
   0xa   :  { %v90_v33 = vld [vmem:[%s2023_s2 + $0x58] sm:$0xff]  ;;  %v254_v35 = vld [vmem:[%s2024_s3 + $0x70] sm:$0xff]  ;;  %v392_v37 = vld [vmem:[%s2026_s5 + $0x8] sm:$0xff] }
   0xb   :  { %264 = vperm.xlu0 %1169, %v241_v12   ;;  %v255_v34 = vld [vmem:[%s2024_s3 + $0x78] sm:$0xff]  ;;  %v1140_v36 = vpack.c.bf16 %v90_v33, %v89_v32  ;;  %v391_v38 = vld [vmem:[%s2026_s5] sm:$0xff]  ;;  %v92_v40 = vld [vmem:[%s2023_s2 + $0x68] sm:$0xff] }
   0xc   :  { %284 = vperm.xlu1 %1170, %v245_v16   ;;  %v91_v39 = vld [vmem:[%s2023_s2 + $0x60] sm:$0xff]  ;;  %v394_v41 = vld [vmem:[%s2026_s5 + $0x18] sm:$0xff]  ;;  %v393_v42 = vld [vmem:[%s2026_s5 + $0x10] sm:$0xff] }
   0xd   :  { %1127 = vmatpush3.bf16.xpose.msra.mxu0 %v1124_v6  ;;  %1161 = vmatpush3.bf16.xpose.msra.mxu1 %v1124_v6  ;;  %v1144_v43 = vpack.c.bf16 %v92_v40, %v91_v39  ;;  %v396_v44 = vld [vmem:[%s2026_s5 + $0x28] sm:$0xff]  ;;  %v395_v45 = vld [vmem:[%s2026_s5 + $0x20] sm:$0xff]  ;;  %v93_v46 = vld [vmem:[%s2023_s2 + $0x70] sm:$0xff] }
   0xe   :  { %1129 = vmatprep.subr.bf16.mxu0 %v1128_v15  ;;  %1154 = vmatprep.subr.bf16.mxu1 %v1128_v15  ;;  %v94_v47 = vld [vmem:[%s2023_s2 + $0x78] sm:$0xff]  ;;  %v397_v49 = vld [vmem:[%s2026_s5 + $0x30] sm:$0xff]  ;;  %v400_v51 = vld [vmem:[%s2026_s5 + $0x48] sm:$0xff] }
   0xf   :  { %279 = vperm.xlu0 %1169, %v244_v17   ;;  %v398_v48 = vld [vmem:[%s2026_s5 + $0x38] sm:$0xff]  ;;  %v1148_v50 = vpack.c.bf16 %v94_v47, %v93_v46  ;;  %v399_v52 = vld [vmem:[%s2026_s5 + $0x40] sm:$0xff]  ;;  %v401_v54 = vld [vmem:[%s2026_s5 + $0x50] sm:$0xff] }
  0x10   :  { %294 = vperm.xlu1 %1170, %v247_v20   ;;  %v402_v53 = vld [vmem:[%s2026_s5 + $0x58] sm:$0xff]  ;;  %v404_v55 = vld [vmem:[%s2026_s5 + $0x68] sm:$0xff]  ;;  %v403_v56 = vld [vmem:[%s2026_s5 + $0x60] sm:$0xff] }
  0x11   :  { %v406_v57 = vld [vmem:[%s2026_s5 + $0x78] sm:$0xff]  ;;  %v64_v58 = vld [vmem:[%s2025_s1 + $0x8] sm:$0xff]  ;;  %v65_v60 = vld [vmem:[%s2025_s1 + $0x10] sm:$0xff] }
  0x12   :  { %v72_v59 = vld [vmem:[%s2025_s1 + $0x48] sm:$0xff]  ;;  %v73_v61 = vld [vmem:[%s2025_s1 + $0x50] sm:$0xff]  ;;  %v66_v63 = vld [vmem:[%s2025_s1 + $0x18] sm:$0xff] }
  0x13   :  { %289 = vperm.xlu0 %1169, %v246_v21   ;;  %v405_v62 = vld [vmem:[%s2026_s5 + $0x70] sm:$0xff]  ;;  %v74_v0 = vld [vmem:[%s2025_s1 + $0x58] sm:$0xff]  ;;  %v67_v1 = vld [vmem:[%s2025_s1 + $0x20] sm:$0xff] }
  0x14   :  { %304 = vperm.xlu1 %1170, %v249_v23   ;;  %v75_v2 = vld [vmem:[%s2025_s1 + $0x60] sm:$0xff]  ;;  %v68_v3 = vld [vmem:[%s2025_s1 + $0x28] sm:$0xff]  ;;  %v69_v5 = vld [vmem:[%s2025_s1 + $0x30] sm:$0xff] }
  0x15   :  { %1131 = vmatpush3.bf16.xpose.msra.mxu0 %v1128_v15  ;;  %1162 = vmatpush3.bf16.xpose.msra.mxu1 %v1128_v15  ;;  %v76_v4 = vld [vmem:[%s2025_s1 + $0x68] sm:$0xff]  ;;  %v77_v6 = vld [vmem:[%s2025_s1 + $0x70] sm:$0xff]  ;;  %v70_v7 = vld [vmem:[%s2025_s1 + $0x38] sm:$0xff] }
  0x16   :  { %1133 = vmatprep.subr.bf16.mxu0 %v1132_v22  ;;  %1155 = vmatprep.subr.bf16.mxu1 %v1132_v22  ;;  %v78_v8 = vld [vmem:[%s2025_s1 + $0x78] sm:$0xff]  ;;  %v1505_v32 = vld [vmem:[%s2027_s4] ss:$0 sm:$0xff] }
  0x17   :  { %299 = vperm.xlu0 %1169, %v248_v24  }
  0x18   :  { %314 = vperm.xlu1 %1170, %v251_v27  }
  0x1b   :  { %309 = vperm.xlu0 %1169, %v250_v28  }
  0x1c   :  { %324 = vperm.xlu1 %1170, %v253_v30  }
  0x1d   :  { %1135 = vmatpush3.bf16.xpose.msra.mxu0 %v1132_v22  ;;  %1163 = vmatpush3.bf16.xpose.msra.mxu1 %v1132_v22 }
  0x1e   :  { %1137 = vmatprep.subr.bf16.mxu0 %v1136_v29  ;;  %1156 = vmatprep.subr.bf16.mxu1 %v1136_v29 }
  0x1f   :  { %319 = vperm.xlu0 %1169, %v252_v31  }
  0x20   :  { %334 = vperm.xlu1 %1170, %v255_v34  }
  0x23   :  { %329 = vperm.xlu0 %1169, %v254_v35  }
  0x24   :  { %412 = vperm.xlu1 %1170, %v392_v37  }
  0x25   :  { %1139 = vmatpush3.bf16.xpose.msra.mxu0 %v1136_v29  ;;  %1164 = vmatpush3.bf16.xpose.msra.mxu1 %v1136_v29 }
  0x26   :  { %1141 = vmatprep.subr.bf16.mxu0 %v1140_v36  ;;  %1157 = vmatprep.subr.bf16.mxu1 %v1140_v36 }
  0x27   :  { %409 = vperm.xlu0 %1169, %v391_v38   ;;  %v1514_v38 = vld [vmem:[%s2028_s6] ss:$0 sm:$0xff] }
  0x28   :  { %418 = vperm.xlu1 %1170, %v394_v41  }
  0x2b   :  { %415 = vperm.xlu0 %1169, %v393_v42  }
  0x2c   :  { %424 = vperm.xlu1 %1170, %v396_v44  }
  0x2d   :  { %1143 = vmatpush3.bf16.xpose.msra.mxu0 %v1140_v36  ;;  %1165 = vmatpush3.bf16.xpose.msra.mxu1 %v1140_v36 }
  0x2e   :  { %1145 = vmatprep.subr.bf16.mxu0 %v1144_v43  ;;  %1158 = vmatprep.subr.bf16.mxu1 %v1144_v43 }
  0x2f   :  { %421 = vperm.xlu0 %1169, %v395_v45  }
  0x30   :  { %430 = vperm.xlu1 %1170, %v398_v48  }
  0x33   :  { %427 = vperm.xlu0 %1169, %v397_v49  }
  0x34   :  { %436 = vperm.xlu1 %1170, %v400_v51  }
  0x35   :  { %1147 = vmatpush3.bf16.xpose.msra.mxu0 %v1144_v43  ;;  %1166 = vmatpush3.bf16.xpose.msra.mxu1 %v1144_v43 }
  0x36   :  { %1149 = vmatprep.subr.bf16.mxu0 %v1148_v50  ;;  %1159 = vmatprep.subr.bf16.mxu1 %v1148_v50 }
  0x37   :  { %433 = vperm.xlu0 %1169, %v399_v52  }
  0x38   :  { %442 = vperm.xlu1 %1170, %v402_v53  }
  0x3b   :  { %439 = vperm.xlu0 %1169, %v401_v54  }
  0x3c   :  { %448 = vperm.xlu1 %1170, %v404_v55  }
  0x3d   :  { %1151 = vmatpush3.bf16.xpose.msra.mxu0 %v1148_v50  ;;  %1167 = vmatpush3.bf16.xpose.msra.mxu1 %v1148_v50 }
  0x3f   :  { %445 = vperm.xlu0 %1169, %v403_v56  }
  0x40   :  { %454 = vperm.xlu1 %1170, %v406_v57  }
  0x43   :  { %451 = vperm.xlu0 %1169, %v405_v62  }
  0x44   :  { %1097 = vmatmul.mubr.f32.vlgmr.msra.gmra.mrb[0].mxu0 %v64_v58  ;;  %1109 = vmatmul.mubr.f32.vlgmr.msra.gmra.mrb[0].mxu1 %v72_v59 }
  0x45   :  { %1099 = vmatprep.mubr.f32.mxu0 %v65_v60  ;;  %1111 = vmatprep.mubr.f32.mxu1 %v73_v61 }
  0x48   :  { %1100 = vmatmul.mubr.f32.gmra.mrb[2].mxu0 %v66_v63  ;;  %1112 = vmatmul.mubr.f32.gmra.mrb[2].mxu1 %v74_v0 }
  0x49   :  { %1102 = vmatprep.mubr.f32.mxu0 %v67_v1  ;;  %1114 = vmatprep.mubr.f32.mxu1 %v75_v2 }
  0x4c   :  { %1103 = vmatmul.mubr.f32.gmra.mrb[4].mxu0 %v68_v3  ;;  %1115 = vmatmul.mubr.f32.gmra.mrb[4].mxu1 %v76_v4 }
  0x4d   :  { %1105 = vmatprep.mubr.f32.mxu0 %v69_v5  ;;  %1117 = vmatprep.mubr.f32.mxu1 %v77_v6 }
  0x50   :  { %1106 = vmatmul.mubr.f32.gmra.mrb[6].mxu0 %v70_v7  ;;  %1118 = vmatmul.mubr.f32.gmra.mrb[6].mxu1 %v78_v8 }
  0x82   :  { %v270_v9 = vpop.permute.xlu1 %269 }
  0x83   :  { %v345_v56 = vadd.f32 %v1505_v32, %v270_v9 }
  0x86   :  { %v260_v10 = vpop.permute.xlu0 %259 }
  0x87   :  { %v1468_v11 = vpop.permute.xlu1 %274  ;;  %v343_v58 = vadd.f32 %v1505_v32, %v260_v10 }
  0x8a   :  { %v265_v12 = vpop.permute.xlu0 %264 }
  0x8b   :  { %v1470_v13 = vpop.permute.xlu1 %284  ;;  %v344_v37 = vadd.f32 %v1505_v32, %v265_v12 }
  0x8c   :  { %v348_v5 = vadd.f32 %v1505_v32, %v1470_v13 }
  0x8e   :  { %v1472_v14 = vpop.permute.xlu0 %279 }
  0x8f   :  { %v1474_v15 = vpop.permute.xlu1 %294 }
  0x92   :  { %v1476_v16 = vpop.permute.xlu0 %289 }
  0x93   :  { %v305_v17 = vpop.permute.xlu1 %304 }
  0x94   :  { %v352_v36 = vadd.f32 %v1505_v32, %v305_v17 }
  0x96   :  { %v300_v18 = vpop.permute.xlu0 %299 }
  0x97   :  { %v1478_v19 = vpop.permute.xlu1 %314  ;;  %v351_v44 = vadd.f32 %v1505_v32, %v300_v18 }
  0x9a   :  { %v1480_v20 = vpop.permute.xlu0 %309 }
  0x9b   :  { %v1482_v21 = vpop.permute.xlu1 %324 }
  0x9e   :  { %v1484_v22 = vpop.permute.xlu0 %319 }
  0x9f   :  { %v1486_v23 = vpop.permute.xlu1 %334 }
  0xa2   :  { %v1488_v24 = vpop.permute.xlu0 %329 }
  0xa3   :  { %v413_v25 = vpop.permute.xlu1 %412 }
  0xa4   :  { %vm461_vm0 = vcmp.eq.s32.totalorder %v413_v25, %v1514_v38 }
  0xa6   :  { %v1490_v26 = vpop.permute.xlu0 %409 }
  0xa7   :  { %v1492_v27 = vpop.permute.xlu1 %418  ;;  %vm460_vm3 = vcmp.eq.s32.totalorder %v1490_v26, %v1514_v38 }
  0xa8   :  { %vm463_vm4 = vcmp.eq.s32.totalorder %v1492_v27, %v1514_v38 }
  0xaa   :  { %v1494_v28 = vpop.permute.xlu0 %415 }
  0xab   :  { %v1496_v29 = vpop.permute.xlu1 %424  ;;  %vm462_vm6 = vcmp.eq.s32.totalorder %v1494_v28, %v1514_v38 }
  0xac   :  { %vm465_vm10 = vcmp.eq.s32.totalorder %v1496_v29, %v1514_v38 }
  0xae   :  { %v1498_v30 = vpop.permute.xlu0 %421 }
  0xaf   :  { %v1500_v31 = vpop.permute.xlu1 %430  ;;  %vm464_vm8 = vcmp.eq.s32.totalorder %v1498_v30, %v1514_v38 }
  0xb0   :  { %vm467_vm14 = vcmp.eq.s32.totalorder %v1500_v31, %v1514_v38 }
  0xb2   :  { %v1507_v33 = vpop.permute.xlu0 %427 }
  0xb3   :  { %v437_v45 = vpop.permute.xlu1 %436  ;;  %vm466_vm12 = vcmp.eq.s32.totalorder %v1507_v33, %v1514_v38 }
  0xb4   :  { %vm469_vm1 = vcmp.eq.s32.totalorder %v437_v45, %v1514_v38 }
  0xb6   :  { %v434_v59 = vpop.permute.xlu0 %433 }
  0xb7   :  { %vm468_vm2 = vcmp.eq.s32.totalorder %v434_v59, %v1514_v38 }
 0x117   :  { %v1098_v34 = vpop.f32.mrb[0].mxu0  ;;  %v1110_v35 = vpop.f32.mrb[0].mxu1 }
 0x118   :  { %v360_v39 = vmul.f32 2.0, %v1098_v34  ;;  %v368_v40 = vmul.f32 2.0, %v1110_v35  ;;  %v161_v41 = vpop.f32.mrb[1].mxu0  ;;  %v201_v42 = vpop.f32.mrb[1].mxu1  ;;  %v349_v35 = vadd.f32 %v1505_v32, %v1476_v16 }
 0x119   :  { %v367_v43 = vmul.f32 2.0, %v201_v42  ;;  %v359_v50 = vmul.f32 2.0, %v161_v41  ;;  %v353_v41 = vadd.f32 %v1505_v32, %v1480_v20  ;;  %v354_v20 = vadd.f32 %v1505_v32, %v1478_v19 }
 0x11a   :  { %v384_v46 = vsub.f32 %v352_v36, %v368_v40  ;;  %v376_v47 = vsub.f32 %v344_v37, %v360_v39  ;;  %v346_v37 = vadd.f32 %v1505_v32, %v1468_v11  ;;  %v350_v39 = vadd.f32 %v1505_v32, %v1474_v15 }
 0x11b   :  { %v1101_v48 = vpop.f32.mrb[2].mxu0  ;;  %v1113_v49 = vpop.f32.mrb[2].mxu1  ;;  %v383_v55 = vsub.f32 %v351_v44, %v367_v43  ;;  %v375_v4 = vsub.f32 %v343_v58, %v359_v50  ;;  %v358_v40 = vadd.f32 %v1505_v32, %v1486_v23 }
 0x11c   :  { %v171_v51 = vpop.f32.mrb[3].mxu0  ;;  %v211_v52 = vpop.f32.mrb[3].mxu1  ;;  %v485_v53 = vsel %vm469_vm1, %v384_v46, -inf  ;;  %v477_v54 = vsel %vm461_vm0, %v376_v47, -inf  ;;  %v493_v2 = vsel %vm461_vm0, inf, %v376_v47  ;;  %v362_v6 = vmul.f32 2.0, %v1101_v48 }
 0x11d   :  { %v361_v57 = vmul.f32 2.0, %v171_v51  ;;  %641 = vmax.xlane.f32.xlu0 %v485_v53  ;;  %625 = vmax.xlane.f32.xlu1 %v477_v54  ;;  %v484_v3 = vsel %vm468_vm2, %v383_v55, -inf  ;;  %v369_v7 = vmul.f32 2.0, %v211_v52  ;;  %v501_v10 = vsel %vm469_vm1, inf, %v384_v46  ;;  %v440_v23 = vpop.permute.xlu0 %439 }
 0x11e   :  { %v492_v34 = vsel %vm460_vm3, inf, %v375_v4  ;;  %v370_v42 = vmul.f32 2.0, %v1113_v49  ;;  %v500_v16 = vsel %vm468_vm2, inf, %v383_v55  ;;  %v476_v44 = vsel %vm460_vm3, %v375_v4, -inf  ;;  %v443_v49 = vpop.permute.xlu1 %442 }
 0x11f   :  { %v1104_v60 = vpop.f32.mrb[4].mxu0  ;;  %v1526_v61 = vpop.f32.mrb[4].mxu1  ;;  %v1528_v62 = vsub.f32 %v345_v56, %v361_v57  ;;  %v385_v11 = vsub.f32 %v353_v41, %v369_v7  ;;  %v378_v45 = vsub.f32 %v346_v37, %v362_v6  ;;  %vm470_vm5 = vcmp.eq.s32.totalorder %v440_v23, %v1514_v38 }
 0x120   :  { %v364_v63 = vmul.f32 2.0, %v1104_v60  ;;  %v181_v0 = vpop.f32.mrb[5].mxu0  ;;  %v221_v1 = vpop.f32.mrb[5].mxu1  ;;  %v386_v48 = vsub.f32 %v354_v20, %v370_v42  ;;  %vm471_vm7 = vcmp.eq.s32.totalorder %v443_v49, %v1514_v38  ;;  %v347_v52 = vadd.f32 %v1505_v32, %v1472_v14 }
 0x121   :  { %673 = vmin.xlane.f32.xlu0 %v493_v2  ;;  %639 = vmax.xlane.f32.xlu1 %v484_v3  ;;  %v486_v26 = vsel %vm470_vm5, %v385_v11, -inf  ;;  %v479_v47 = vsel %vm463_vm4, %v378_v45, -inf  ;;  %v363_v19 = vmul.f32 2.0, %v181_v0  ;;  %v494_v51 = vsel %vm462_vm6, inf, %v1528_v62  ;;  %v446_v27 = vpop.permute.xlu0 %445 }
 0x122   :  { %v1545_v13 = vsub.f32 %v348_v5, %v364_v63  ;;  %v487_v50 = vsel %vm471_vm7, %v386_v48, -inf  ;;  %v371_v53 = vmul.f32 2.0, %v221_v1  ;;  %v495_v54 = vsel %vm463_vm4, inf, %v378_v45  ;;  %v449_v1 = vpop.permute.xlu1 %448 }
 0x123   :  { %v1107_v8 = vpop.f32.mrb[6].mxu0  ;;  %v1119_v9 = vpop.f32.mrb[6].mxu1  ;;  %v502_v55 = vsel %vm470_vm5, inf, %v385_v11  ;;  %v379_v56 = vsub.f32 %v347_v52, %v363_v19  ;;  %v355_v57 = vadd.f32 %v1505_v32, %v1484_v22  ;;  %v503_v58 = vsel %vm471_vm7, inf, %v386_v48 }
 0x124   :  { %v366_v12 = vmul.f32 2.0, %v1107_v8  ;;  %v374_v17 = vmul.f32 2.0, %v1119_v9  ;;  %v191_v18 = vpop.f32.mrb[7].mxu0  ;;  %v1540_v25 = vpop.f32.mrb[7].mxu1  ;;  %vm472_vm9 = vcmp.eq.s32.totalorder %v446_v27, %v1514_v38  ;;  %v372_v60 = vmul.f32 2.0, %v1526_v61 }
 0x125   :  { %v365_v36 = vmul.f32 2.0, %v191_v18  ;;  %689 = vmin.xlane.f32.xlu0 %v501_v10  ;;  %671 = vmin.xlane.f32.xlu1 %v492_v34  ;;  %v480_v14 = vsel %vm464_vm8, %v379_v56, -inf  ;;  %v387_v59 = vsub.f32 %v355_v57, %v371_v53  ;;  %v478_v22 = vsel %vm462_vm6, %v1528_v62, -inf  ;;  %v452_v30 = vpop.permute.xlu0 %451 }
 0x126   :  { %v1564_v46 = vsub.f32 %v350_v39, %v366_v12  ;;  %v1566_v15 = vsub.f32 %v358_v40, %v374_v17  ;;  %v356_v0 = vadd.f32 %v1505_v32, %v1482_v21  ;;  %v481_v61 = vsel %vm465_vm10, %v1545_v13, -inf }
 0x127   :  { %v1557_v43 = vsub.f32 %v349_v35, %v365_v36  ;;  %v488_v63 = vsel %vm472_vm9, %v387_v59, -inf  ;;  %v496_v28 = vsel %vm464_vm8, inf, %v379_v56  ;;  %vm473_vm11 = vcmp.eq.s32.totalorder %v449_v1, %v1514_v38 }
 0x128   :  { %v388_v62 = vsub.f32 %v356_v0, %v372_v60  ;;  %v373_v21 = vmul.f32 2.0, %v1540_v25  ;;  %v504_v3 = vsel %vm472_vm9, inf, %v387_v59  ;;  %v357_v4 = vadd.f32 %v1505_v32, %v1488_v24  ;;  %v455_v24 = vpop.permute.xlu1 %454 }
 0x129   :  { %687 = vmin.xlane.f32.xlu1 %v500_v16  ;;  %623 = vmax.xlane.f32.xlu0 %v476_v44  ;;  %v497_v6 = vsel %vm465_vm10, inf, %v1545_v13  ;;  %v482_v7 = vsel %vm466_vm12, %v1557_v43, -inf  ;;  %vm474_vm13 = vcmp.eq.s32.totalorder %v452_v30, %v1514_v38  ;;  %v483_v32 = vsel %vm467_vm14, %v1564_v46, -inf }
 0x12a   :  { %v489_v2 = vsel %vm473_vm11, %v388_v62, -inf  ;;  %v389_v5 = vsub.f32 %v357_v4, %v373_v21  ;;  %v505_v8 = vsel %vm473_vm11, inf, %v388_v62  ;;  %v498_v33 = vsel %vm466_vm12, inf, %v1557_v43 }
 0x12b   :  { %vm475_vm15 = vcmp.eq.s32.totalorder %v455_v24, %v1514_v38  ;;  %v499_v12 = vsel %vm467_vm14, inf, %v1564_v46  ;;  %v1659_v45 = vstv %s2029_s0  ;;  %vm1009_vm4 = vcmask 7168  }
 0x12c   :  { %v490_v9 = vsel %vm474_vm13, %v389_v5, -inf  ;;  %v491_v29 = vsel %vm475_vm15, %v1566_v15, -inf  ;;  %v506_v10 = vsel %vm474_vm13, inf, %v389_v5  ;;  %v507_v17 = vsel %vm475_vm15, inf, %v1566_v15 }
 0x12d   :  { %643 = vmax.xlane.f32.xlu1 %v486_v26  ;;  %629 = vmax.xlane.f32.xlu0 %v479_v47 }
 0x131   :  { %645 = vmax.xlane.f32.xlu0 %v487_v50  ;;  %675 = vmin.xlane.f32.xlu1 %v494_v51 }
 0x135   :  { %677 = vmin.xlane.f32.xlu0 %v495_v54  ;;  %691 = vmin.xlane.f32.xlu1 %v502_v55 }
 0x139   :  { %693 = vmin.xlane.f32.xlu0 %v503_v58  ;;  %631 = vmax.xlane.f32.xlu1 %v480_v14 }
 0x13d   :  { %627 = vmax.xlane.f32.xlu0 %v478_v22  ;;  %647 = vmax.xlane.f32.xlu1 %v488_v63 }
 0x141   :  { %633 = vmax.xlane.f32.xlu0 %v481_v61  ;;  %679 = vmin.xlane.f32.xlu1 %v496_v28 }
 0x145   :  { %649 = vmax.xlane.f32.xlu0 %v489_v2  ;;  %695 = vmin.xlane.f32.xlu1 %v504_v3 }
 0x149   :  { %681 = vmin.xlane.f32.xlu0 %v497_v6  ;;  %635 = vmax.xlane.f32.xlu1 %v482_v7 }
 0x14d   :  { %697 = vmin.xlane.f32.xlu0 %v505_v8  ;;  %651 = vmax.xlane.f32.xlu1 %v490_v9 }
 0x151   :  { %637 = vmax.xlane.f32.xlu0 %v483_v32  ;;  %683 = vmin.xlane.f32.xlu1 %v498_v33 }
 0x155   :  { %653 = vmax.xlane.f32.xlu0 %v491_v29  ;;  %699 = vmin.xlane.f32.xlu1 %v506_v10 }
 0x159   :  { %685 = vmin.xlane.f32.xlu0 %v499_v12 }
 0x15d   :  { %701 = vmin.xlane.f32.xlu0 %v507_v17 }
 0x1aa   :  { %v642_v31 = vpop.xlane.xlu0 %641  ;;  %v626_v18 = vpop.xlane.xlu1 %625 }
 0x1ab   :  { %v1640_v25 = vmax.f32 %v642_v31, 1e-12  ;;  %v704_v34 = vmax.f32 %v626_v18, 1e-12 }
 0x1ad   :  { %1171 = vrsqrt.f32 %v704_v34  ;;  %vm784_vm0 = vcmp.eq.f32.partialorder %v1640_v25, inf  ;;  %v787_v15 = vand.u32 2147483648, %v1640_v25  ;;  %vm786_vm1 = vcmp.eq.f32.partialorder %v1640_v25, 0.0 }
 0x1ae   :  { %v674_v13 = vpop.xlane.xlu0 %673  ;;  %v640_v35 = vpop.xlane.xlu1 %639  ;;  %1173 = vrsqrt.f32 %v1640_v25  ;;  %vm728_vm2 = vcmp.eq.f32.partialorder %v704_v34, inf  ;;  %vm730_vm3 = vcmp.eq.f32.partialorder %v704_v34, 0.0  ;;  %v731_v23 = vand.u32 2147483648, %v704_v34 }
 0x1af   :  { %v832_v38 = vmax.f32 %v674_v13, 1e-12  ;;  %v1643_v36 = vmax.f32 %v640_v35, 1e-12 }
 0x1b1   :  { %1175 = vrsqrt.f32 %v832_v38  ;;  %vm856_vm5 = vcmp.eq.f32.partialorder %v832_v38, inf  ;;  %vm858_vm6 = vcmp.eq.f32.partialorder %v832_v38, 0.0  ;;  %v859_v49 = vand.u32 2147483648, %v832_v38 }
 0x1b2   :  { %1177 = vrsqrt.f32 %v1643_v36  ;;  %v690_v37 = vpop.xlane.xlu0 %689  ;;  %v672_v39 = vpop.xlane.xlu1 %671  ;;  %vm777_vm7 = vcmp.eq.f32.partialorder %v1643_v36, inf  ;;  %vm779_vm8 = vcmp.eq.f32.partialorder %v1643_v36, 0.0  ;;  %v780_v54 = vand.u32 2147483648, %v1643_v36 }
 0x1b3   :  { %v1646_v40 = vmax.f32 %v690_v37, 1e-12  ;;  %v1648_v41 = vmax.f32 %v672_v39, 1e-12 }
 0x1b5   :  { %1179 = vrsqrt.f32 %v1646_v40  ;;  %vm912_vm9 = vcmp.eq.f32.partialorder %v1646_v40, inf  ;;  %vm914_vm10 = vcmp.eq.f32.partialorder %v1646_v40, 0.0  ;;  %v915_v58 = vand.u32 2147483648, %v1646_v40 }
 0x1b6   :  { %1181 = vrsqrt.f32 %v1648_v41  ;;  %v688_v42 = vpop.xlane.xlu1 %687  ;;  %v624_v43 = vpop.xlane.xlu0 %623  ;;  %vm849_vm11 = vcmp.eq.f32.partialorder %v1648_v41, inf  ;;  %vm851_vm12 = vcmp.eq.f32.partialorder %v1648_v41, 0.0  ;;  %v852_v63 = vand.u32 2147483648, %v1648_v41 }
 0x1b7   :  { %v1652_v16 = vmax.f32 %v688_v42, 1e-12  ;;  %v1654_v44 = vmax.f32 %v624_v43, 1e-12  ;;  %v1172_v11 = vpop.eup %1171 }
 0x1b8   :  { %v1174_v46 = vpop.eup %1173  ;;  %v727_v20 = vmul.f32 %v1172_v11, %v704_v34 }
 0x1b9   :  { %1183 = vrsqrt.f32 %v1652_v16  ;;  %v783_v50 = vmul.f32 %v1174_v46, %v1640_v25  ;;  %vm905_vm13 = vcmp.eq.f32.partialorder %v1652_v16, inf  ;;  %vm907_vm14 = vcmp.eq.f32.partialorder %v1652_v16, 0.0 }
 0x1ba   :  { %1185 = vrsqrt.f32 %v1654_v44  ;;  %v644_v26 = vpop.xlane.xlu1 %643  ;;  %v630_v47 = vpop.xlane.xlu0 %629  ;;  %v729_v51 = vsel %vm728_vm2, %v704_v34, %v727_v20  ;;  %v908_v9 = vand.u32 2147483648, %v1652_v16  ;;  %vm721_vm15 = vcmp.eq.f32.partialorder %v1654_v44, inf }
 0x1bb   :  { %v1176_v48 = vpop.eup %1175  ;;  %v1669_v53 = vmax.f32 %v644_v26, 1e-12  ;;  %v1674_v55 = vmax.f32 %v630_v47, 1e-12  ;;  %v732_v60 = vsel %vm730_vm3, %v731_v23, %v729_v51  ;;  %v785_v61 = vsel %vm784_vm0, %v1640_v25, %v783_v50 }
 0x1bc   :  { %v1178_v19 = vpop.eup %1177  ;;  %v855_v52 = vmul.f32 %v1176_v48, %v832_v38  ;;  %v788_v7 = vsel %vm786_vm1, %v787_v15, %v785_v61  ;;  %vm723_vm0 = vcmp.eq.f32.partialorder %v1654_v44, 0.0  ;;  %v724_v31 = vand.u32 2147483648, %v1654_v44 }
 0x1bd   :  { %v776_v57 = vmul.f32 %v1178_v19, %v1643_v36  ;;  %1187 = vrsqrt.f32 %v1669_v53  ;;  %vm791_vm1 = vcmp.eq.f32.partialorder %v1669_v53, inf  ;;  %vm793_vm2 = vcmp.eq.f32.partialorder %v1669_v53, 0.0 }
 0x1be   :  { %v857_v56 = vsel %vm856_vm5, %v832_v38, %v855_v52  ;;  %v646_v14 = vpop.xlane.xlu0 %645  ;;  %v676_v59 = vpop.xlane.xlu1 %675  ;;  %1189 = vrsqrt.f32 %v1674_v55  ;;  %vm742_vm3 = vcmp.eq.f32.partialorder %v1674_v55, inf  ;;  %vm744_vm5 = vcmp.eq.f32.partialorder %v1674_v55, 0.0 }
 0x1bf   :  { %v1180_v27 = vpop.eup %1179  ;;  %v860_v22 = vsel %vm858_vm6, %v859_v49, %v857_v56  ;;  %v778_v2 = vsel %vm777_vm7, %v1643_v36, %v776_v57  ;;  %v1699_v4 = vmax.f32 %v646_v14, 1e-12  ;;  %v1725_v34 = vmax.f32 %v676_v59, 1e-12 }
 0x1c0   :  { %v1182_v0 = vpop.eup %1181  ;;  %v961_v28 = vsub.f32 %v732_v60, %v860_v22  ;;  %v911_v62 = vmul.f32 %v1180_v27, %v1646_v40  ;;  %v781_v12 = vsel %vm779_vm8, %v780_v54, %v778_v2  ;;  %v794_v57 = vand.u32 2147483648, %v1669_v53 }
 0x1c1   :  { %v848_v1 = vmul.f32 %v1182_v0, %v1648_v41  ;;  %1191 = vrsqrt.f32 %v1699_v4  ;;  %v745_v14 = vand.u32 2147483648, %v1674_v55  ;;  %vm798_vm6 = vcmp.eq.f32.partialorder %v1699_v4, inf }
 0x1c2   :  { %v978_v21 = vadd.f32 %v1659_v45, %v961_v28  ;;  %v913_v3 = vsel %vm912_vm9, %v1646_v40, %v911_v62  ;;  %v678_v30 = vpop.xlane.xlu0 %677  ;;  %v692_v5 = vpop.xlane.xlu1 %691  ;;  %vm800_vm7 = vcmp.eq.f32.partialorder %v1699_v4, 0.0  ;;  %v801_v60 = vand.u32 2147483648, %v1699_v4 }
 0x1c3   :  { %v1184_v6 = vpop.eup %1183  ;;  %v916_v8 = vsel %vm914_vm10, %v915_v58, %v913_v3  ;;  %v850_v29 = vsel %vm849_vm11, %v1648_v41, %v848_v1  ;;  %v1734_v39 = vmax.f32 %v678_v30, 1e-12  ;;  %v1736_v11 = vmax.f32 %v692_v5, 1e-12 }
 0x1c4   :  { %v1186_v24 = vpop.eup %1185  ;;  %v994_v32 = vmax.f32 %v978_v21, 0.0  ;;  %v969_v33 = vsub.f32 %v788_v7, %v916_v8  ;;  %v904_v10 = vmul.f32 %v1184_v6, %v1652_v16  ;;  %v853_v38 = vsel %vm851_vm12, %v852_v63, %v850_v29 }
 0x1c5   :  { %v720_v17 = vmul.f32 %v1186_v24, %v1654_v44  ;;  %1193 = vrsqrt.f32 %v1734_v39  ;;  %vm863_vm8 = vcmp.eq.f32.partialorder %v1725_v34, inf  ;;  %v866_v0 = vand.u32 2147483648, %v1725_v34 }
 0x1c6   :  { %1011 = vst.msk [vmem:[%s2030_s7 + $0x8] sm:$0xff] %vm1009_vm4, %v994_v32  ;;  %v986_v18 = vadd.f32 %v1659_v45, %v969_v33  ;;  %v906_v25 = vsel %vm905_vm13, %v1652_v16, %v904_v10  ;;  %v694_v13 = vpop.xlane.xlu0 %693  ;;  %v632_v35 = vpop.xlane.xlu1 %631  ;;  %1195 = vrsqrt.f32 %v1725_v34  ;;  %vm870_vm9 = vcmp.eq.f32.partialorder %v1734_v39, inf }
 0x1c7   :  { %v909_v36 = vsel %vm907_vm14, %v908_v9, %v906_v25  ;;  %v722_v37 = vsel %vm721_vm15, %v1654_v44, %v720_v17  ;;  %v1188_v15 = vpop.eup %1187  ;;  %1197 = vrsqrt.f32 %v1736_v11  ;;  %v1747_v48 = vmax.f32 %v694_v13, 1e-12 }
 0x1c8   :  { %v1002_v40 = vmax.f32 %v986_v18, 0.0  ;;  %v968_v42 = vsub.f32 %v781_v12, %v909_v36  ;;  %v725_v43 = vsel %vm723_vm0, %v724_v31, %v722_v37  ;;  %v1190_v20 = vpop.eup %1189  ;;  %v790_v49 = vmul.f32 %v1188_v15, %v1669_v53 }
 0x1c9   :  { %v960_v46 = vsub.f32 %v725_v43, %v853_v38  ;;  %v741_v19 = vmul.f32 %v1190_v20, %v1674_v55  ;;  %v1755_v50 = vmax.f32 %v632_v35, 1e-12  ;;  %1199 = vrsqrt.f32 %v1747_v48 }
 0x1ca   :  { %1019 = vst.msk [vmem:[%s2030_s7 + $0x48] sm:$0xff] %vm1009_vm4, %v1002_v40  ;;  %v985_v41 = vadd.f32 %v1659_v45, %v968_v42  ;;  %v628_v16 = vpop.xlane.xlu0 %627  ;;  %v648_v44 = vpop.xlane.xlu1 %647  ;;  %v792_v59 = vsel %vm791_vm1, %v1669_v53, %v790_v49  ;;  %vm872_vm10 = vcmp.eq.f32.partialorder %v1734_v39, 0.0  ;;  %v873_v5 = vand.u32 2147483648, %v1734_v39 }
 0x1cb   :  { %v977_v23 = vadd.f32 %v1659_v45, %v960_v46  ;;  %v1757_v51 = vmax.f32 %v628_v16, 1e-12  ;;  %v1192_v56 = vpop.eup %1191  ;;  %1201 = vrsqrt.f32 %v1755_v50  ;;  %v1769_v58 = vmax.f32 %v648_v44, 1e-12 }
 0x1cc   :  { %v1001_v26 = vmax.f32 %v985_v41, 0.0  ;;  %v743_v27 = vsel %vm742_vm3, %v1674_v55, %v741_v19  ;;  %v797_v28 = vmul.f32 %v1192_v56, %v1699_v4  ;;  %v795_v3 = vsel %vm793_vm2, %v794_v57, %v792_v59 }
 0x1cd   :  { %v993_v47 = vmax.f32 %v977_v23, 0.0  ;;  %1203 = vrsqrt.f32 %v1757_v51  ;;  %v746_v30 = vsel %vm744_vm5, %v745_v14, %v743_v27  ;;  %vm919_vm11 = vcmp.eq.f32.partialorder %v1736_v11, inf }
 0x1ce   :  { %1018 = vst.msk [vmem:[%s2030_s7 + $0x40] sm:$0xff] %vm1009_vm4, %v1001_v26  ;;  %v634_v52 = vpop.xlane.xlu0 %633  ;;  %v680_v54 = vpop.xlane.xlu1 %679  ;;  %1205 = vrsqrt.f32 %v1769_v58  ;;  %vm865_vm12 = vcmp.eq.f32.partialorder %v1725_v34, 0.0  ;;  %v922_v8 = vand.u32 2147483648, %v1736_v11  ;;  %v799_v33 = vsel %vm798_vm6, %v1699_v4, %v797_v28 }
 0x1cf   :  { %1010 = vst.msk [vmem:[%s2030_s7] sm:$0xff] %vm1009_vm4, %v993_v47  ;;  %v1194_v63 = vpop.eup %1193  ;;  %v1786_v1 = vmax.f32 %v680_v54, 1e-12  ;;  %v1798_v9 = vmax.f32 %v634_v52, 1e-12  ;;  %vm921_vm13 = vcmp.eq.f32.partialorder %v1736_v11, 0.0 }
 0x1d0   :  { %v1196_v61 = vpop.eup %1195  ;;  %v869_v62 = vmul.f32 %v1194_v63, %v1734_v39  ;;  %vm926_vm14 = vcmp.eq.f32.partialorder %v1747_v48, inf  ;;  %vm928_vm15 = vcmp.eq.f32.partialorder %v1747_v48, 0.0  ;;  %v929_v31 = vand.u32 2147483648, %v1747_v48 }
 0x1d1   :  { %v1198_v2 = vpop.eup %1197  ;;  %v862_v53 = vmul.f32 %v1196_v61, %v1725_v34  ;;  %1207 = vrsqrt.f32 %v1786_v1  ;;  %vm735_vm0 = vcmp.eq.f32.partialorder %v1757_v51, inf  ;;  %v738_v16 = vand.u32 2147483648, %v1757_v51 }
 0x1d2   :  { %v650_v22 = vpop.xlane.xlu0 %649  ;;  %v696_v21 = vpop.xlane.xlu1 %695  ;;  %v871_v6 = vsel %vm870_vm9, %v1734_v39, %v869_v62  ;;  %v918_v7 = vmul.f32 %v1198_v2, %v1736_v11  ;;  %1209 = vrsqrt.f32 %v1798_v9  ;;  %v802_v39 = vsel %vm800_vm7, %v801_v60, %v799_v33 }
 0x1d3   :  { %v874_v55 = vsel %vm872_vm10, %v873_v5, %v871_v6  ;;  %v1804_v32 = vmax.f32 %v696_v21, 1e-12  ;;  %v1200_v12 = vpop.eup %1199  ;;  %v864_v40 = vsel %vm863_vm8, %v1725_v34, %v862_v53  ;;  %v1822_v42 = vmax.f32 %v650_v22, 1e-12 }
 0x1d4   :  { %v963_v29 = vsub.f32 %v746_v30, %v874_v55  ;;  %v920_v10 = vsel %vm919_vm11, %v1736_v11, %v918_v7  ;;  %v925_v35 = vmul.f32 %v1200_v12, %v1747_v48  ;;  %vm737_vm1 = vcmp.eq.f32.partialorder %v1757_v51, 0.0 }
 0x1d5   :  { %v923_v17 = vsel %vm921_vm13, %v922_v8, %v920_v10  ;;  %v1202_v18 = vpop.eup %1201  ;;  %1211 = vrsqrt.f32 %v1804_v32  ;;  %vm749_vm2 = vcmp.eq.f32.partialorder %v1755_v50, inf  ;;  %vm751_vm3 = vcmp.eq.f32.partialorder %v1755_v50, 0.0 }
 0x1d6   :  { %v682_v24 = vpop.xlane.xlu0 %681  ;;  %v980_v25 = vadd.f32 %v1659_v45, %v963_v29  ;;  %v970_v13 = vsub.f32 %v795_v3, %v923_v17  ;;  %v636_v38 = vpop.xlane.xlu1 %635  ;;  %v927_v46 = vsel %vm926_vm14, %v1747_v48, %v925_v35  ;;  %v748_v41 = vmul.f32 %v1202_v18, %v1755_v50 }
 0x1d7   :  { %v1204_v37 = vpop.eup %1203  ;;  %v930_v4 = vsel %vm928_vm15, %v929_v31, %v927_v46  ;;  %v867_v48 = vsel %vm865_vm12, %v866_v0, %v864_v40  ;;  %v1843_v19 = vmax.f32 %v682_v24, 1e-12  ;;  %1213 = vrsqrt.f32 %v1822_v42 }
 0x1d8   :  { %v996_v43 = vmax.f32 %v980_v25, 0.0  ;;  %v987_v11 = vadd.f32 %v1659_v45, %v970_v13  ;;  %v734_v15 = vmul.f32 %v1204_v37, %v1757_v51  ;;  %v1206_v44 = vpop.eup %1205  ;;  %v971_v23 = vsub.f32 %v802_v39, %v930_v4 }
 0x1d9   :  { %v750_v34 = vsel %vm749_vm2, %v1755_v50, %v748_v41  ;;  %v804_v57 = vmul.f32 %v1206_v44, %v1769_v58  ;;  %1215 = vrsqrt.f32 %v1843_v19  ;;  %v1855_v14 = vmax.f32 %v636_v38, 1e-12 }
 0x1da   :  { %v698_v36 = vpop.xlane.xlu0 %697  ;;  %1013 = vst.msk [vmem:[%s2030_s7 + $0x18] sm:$0xff] %vm1009_vm4, %v996_v43  ;;  %v1003_v20 = vmax.f32 %v987_v11, 0.0  ;;  %v736_v26 = vsel %vm735_vm0, %v1757_v51, %v734_v15  ;;  %v988_v52 = vadd.f32 %v1659_v45, %v971_v23  ;;  %v652_v51 = vpop.xlane.xlu1 %651  ;;  %v752_v0 = vand.u32 2147483648, %v1755_v50 }
 0x1db   :  { %v739_v49 = vsel %vm737_vm1, %v738_v16, %v736_v26  ;;  %v1208_v56 = vpop.eup %1207  ;;  %v1859_v22 = vmax.f32 %v698_v36, 1e-12  ;;  %vm877_vm5 = vcmp.eq.f32.partialorder %v1786_v1, inf  ;;  %v880_v61 = vand.u32 2147483648, %v1786_v1 }
 0x1dc   :  { %1020 = vst.msk [vmem:[%s2030_s7 + $0x50] sm:$0xff] %vm1009_vm4, %v1003_v20  ;;  %v962_v54 = vsub.f32 %v739_v49, %v867_v48  ;;  %v1004_v59 = vmax.f32 %v988_v52, 0.0  ;;  %v876_v60 = vmul.f32 %v1208_v56, %v1786_v1  ;;  %v1210_v28 = vpop.eup %1209  ;;  %vm805_vm6 = vcmp.eq.f32.partialorder %v1769_v58, inf }
 0x1dd   :  { %vm879_vm7 = vcmp.eq.f32.partialorder %v1786_v1, 0.0  ;;  %v753_v3 = vsel %vm751_vm3, %v752_v0, %v750_v34  ;;  %1217 = vrsqrt.f32 %v1855_v14  ;;  %v1873_v30 = vmax.f32 %v652_v51, 1e-12 }
 0x1de   :  { %v638_v47 = vpop.xlane.xlu0 %637  ;;  %v979_v27 = vadd.f32 %v1659_v45, %v962_v54  ;;  %1021 = vst.msk [vmem:[%s2030_s7 + $0x58] sm:$0xff] %vm1009_vm4, %v1004_v59  ;;  %v878_v21 = vsel %vm877_vm5, %v1786_v1, %v876_v60  ;;  %v806_v5 = vsel %vm805_vm6, %v1769_v58, %v804_v57  ;;  %1219 = vrsqrt.f32 %v1859_v22  ;;  %v684_v1 = vpop.xlane.xlu1 %683 }
 0x1df   :  { %v1212_v2 = vpop.eup %1211  ;;  %v881_v50 = vsel %vm879_vm7, %v880_v61, %v878_v21  ;;  %vm807_vm8 = vcmp.eq.f32.partialorder %v1769_v58, 0.0  ;;  %v808_v8 = vand.u32 2147483648, %v1769_v58  ;;  %vm933_vm9 = vcmp.eq.f32.partialorder %v1804_v32, inf }
 0x1e0   :  { %v995_v62 = vmax.f32 %v979_v27, 0.0  ;;  %v964_v6 = vsub.f32 %v753_v3, %v881_v50  ;;  %v932_v7 = vmul.f32 %v1212_v2, %v1804_v32  ;;  %v936_v24 = vand.u32 2147483648, %v1804_v32 }
 0x1e1   :  { %v755_v55 = vmul.f32 %v1210_v28, %v1798_v9  ;;  %vm935_vm10 = vcmp.eq.f32.partialorder %v1804_v32, 0.0  ;;  %v809_v10 = vsel %vm807_vm8, %v808_v8, %v806_v5  ;;  %1221 = vrsqrt.f32 %v1873_v30  ;;  %v1214_v58 = vpop.eup %1213 }
 0x1e2   :  { %v654_v63 = vpop.xlane.xlu0 %653  ;;  %1012 = vst.msk [vmem:[%s2030_s7 + $0x10] sm:$0xff] %vm1009_vm4, %v995_v62  ;;  %v981_v33 = vadd.f32 %v1659_v45, %v964_v6  ;;  %v934_v29 = vsel %vm933_vm9, %v1804_v32, %v932_v7  ;;  %v1891_v17 = vmax.f32 %v638_v47, 1e-12  ;;  %v1893_v25 = vmax.f32 %v684_v1, 1e-12  ;;  %v700_v39 = vpop.xlane.xlu1 %699 }
 0x1e3   :  { %v937_v12 = vsel %vm935_vm10, %v936_v24, %v934_v29  ;;  %v1895_v13 = vmax.f32 %v654_v63, 1e-12  ;;  %v1216_v35 = vpop.eup %1215  ;;  %vm756_vm11 = vcmp.eq.f32.partialorder %v1798_v9, inf  ;;  %v759_v38 = vand.u32 2147483648, %v1798_v9 }
 0x1e4   :  { %v997_v31 = vmax.f32 %v981_v33, 0.0  ;;  %v972_v18 = vsub.f32 %v809_v10, %v937_v12  ;;  %1223 = vrsqrt.f32 %v1891_v17  ;;  %v757_v32 = vsel %vm756_vm11, %v1798_v9, %v755_v55 }
 0x1e5   :  { %v883_v37 = vmul.f32 %v1216_v35, %v1843_v19  ;;  %1225 = vrsqrt.f32 %v1893_v25  ;;  %v811_v40 = vmul.f32 %v1214_v58, %v1822_v42  ;;  %vm884_vm12 = vcmp.eq.f32.partialorder %v1843_v19, inf }
 0x1e6   :  { %v686_v53 = vpop.xlane.xlu0 %685  ;;  %1014 = vst.msk [vmem:[%s2030_s7 + $0x20] sm:$0xff] %vm1009_vm4, %v997_v31  ;;  %v989_v36 = vadd.f32 %v1659_v45, %v972_v18  ;;  %v887_v43 = vand.u32 2147483648, %v1843_v19  ;;  %1227 = vrsqrt.f32 %v1895_v13  ;;  %vm758_vm13 = vcmp.eq.f32.partialorder %v1798_v9, 0.0 }
 0x1e7   :  { %v885_v15 = vsel %vm884_vm12, %v1843_v19, %v883_v37  ;;  %vm886_vm14 = vcmp.eq.f32.partialorder %v1843_v19, 0.0  ;;  %v1218_v4 = vpop.eup %1217  ;;  %v760_v41 = vsel %vm758_vm13, %v759_v38, %v757_v32  ;;  %v1915_v44 = vmax.f32 %v700_v39, 1e-12 }
 0x1e8   :  { %v1005_v46 = vmax.f32 %v989_v36, 0.0  ;;  %v888_v16 = vsel %vm886_vm14, %v887_v43, %v885_v15  ;;  %v1917_v20 = vmax.f32 %v686_v53, 1e-12  ;;  %v1220_v23 = vpop.eup %1219  ;;  %vm812_vm15 = vcmp.eq.f32.partialorder %v1822_v42, inf }
 0x1e9   :  { %v965_v9 = vsub.f32 %v760_v41, %v888_v16  ;;  %v813_v47 = vsel %vm812_vm15, %v1822_v42, %v811_v40  ;;  %v815_v48 = vand.u32 2147483648, %v1822_v42  ;;  %v939_v49 = vmul.f32 %v1220_v23, %v1859_v22 }
 0x1ea   :  { %v702_v11 = vpop.xlane.xlu0 %701  ;;  %1022 = vst.msk [vmem:[%s2030_s7 + $0x60] sm:$0xff] %vm1009_vm4, %v1005_v46  ;;  %1229 = vrsqrt.f32 %v1915_v44  ;;  %vm940_vm0 = vcmp.eq.f32.partialorder %v1859_v22, inf  ;;  %v943_v52 = vand.u32 2147483648, %v1859_v22  ;;  %vm814_vm1 = vcmp.eq.f32.partialorder %v1822_v42, 0.0 }
 0x1eb   :  { %v1924_v26 = vmax.f32 %v702_v11, 1e-12  ;;  %v982_v19 = vadd.f32 %v1659_v45, %v965_v9  ;;  %1231 = vrsqrt.f32 %v1917_v20  ;;  %v1222_v54 = vpop.eup %1221  ;;  %v762_v51 = vmul.f32 %v1218_v4, %v1855_v14 }
 0x1ec   :  { %v941_v56 = vsel %vm940_vm0, %v1859_v22, %v939_v49  ;;  %vm942_vm2 = vcmp.eq.f32.partialorder %v1859_v22, 0.0  ;;  %v816_v34 = vsel %vm814_vm1, %v815_v48, %v813_v47  ;;  %vm763_vm3 = vcmp.eq.f32.partialorder %v1855_v14, inf }
 0x1ed   :  { %v998_v57 = vmax.f32 %v982_v19, 0.0  ;;  %v944_v59 = vsel %vm942_vm2, %v943_v52, %v941_v56  ;;  %1233 = vrsqrt.f32 %v1924_v26  ;;  %vm765_vm5 = vcmp.eq.f32.partialorder %v1855_v14, 0.0 }
 0x1ee   :  { %v1224_v27 = vpop.eup %1223  ;;  %v766_v60 = vand.u32 2147483648, %v1855_v14  ;;  %v973_v63 = vsub.f32 %v816_v34, %v944_v59  ;;  %vm819_vm6 = vcmp.eq.f32.partialorder %v1873_v30, inf  ;;  %vm821_vm7 = vcmp.eq.f32.partialorder %v1873_v30, 0.0 }
 0x1ef   :  { %v1226_v42 = vpop.eup %1225  ;;  %1015 = vst.msk [vmem:[%s2030_s7 + $0x28] sm:$0xff] %vm1009_vm4, %v998_v57  ;;  %v822_v22 = vand.u32 2147483648, %v1873_v30  ;;  %vm770_vm8 = vcmp.eq.f32.partialorder %v1891_v17, inf  ;;  %v764_v61 = vsel %vm763_vm3, %v1855_v14, %v762_v51  ;;  %v818_v62 = vmul.f32 %v1222_v54, %v1873_v30 }
 0x1f0   :  { %v1228_v0 = vpop.eup %1227  ;;  %v990_v28 = vadd.f32 %v1659_v45, %v973_v63  ;;  %vm772_vm9 = vcmp.eq.f32.partialorder %v1891_v17, 0.0  ;;  %v890_v21 = vmul.f32 %v1226_v42, %v1893_v25  ;;  %v773_v2 = vand.u32 2147483648, %v1891_v17 }
 0x1f1   :  { %vm891_vm10 = vcmp.eq.f32.partialorder %v1893_v25, inf  ;;  %vm893_vm11 = vcmp.eq.f32.partialorder %v1893_v25, 0.0  ;;  %v894_v3 = vand.u32 2147483648, %v1893_v25  ;;  %v769_v5 = vmul.f32 %v1224_v27, %v1891_v17 }
 0x1f2   :  { %v1006_v50 = vmax.f32 %v990_v28, 0.0  ;;  %v892_v6 = vsel %vm891_vm10, %v1893_v25, %v890_v21  ;;  %vm826_vm12 = vcmp.eq.f32.partialorder %v1895_v13, inf  ;;  %v767_v7 = vsel %vm765_vm5, %v766_v60, %v764_v61 }
 0x1f3   :  { %v895_v1 = vsel %vm893_vm11, %v894_v3, %v892_v6  ;;  %v825_v8 = vmul.f32 %v1228_v0, %v1895_v13  ;;  %v829_v24 = vand.u32 2147483648, %v1895_v13  ;;  %v820_v55 = vsel %vm819_vm6, %v1873_v30, %v818_v62 }
 0x1f4   :  { %v1230_v53 = vpop.eup %1229  ;;  %1023 = vst.msk [vmem:[%s2030_s7 + $0x68] sm:$0xff] %vm1009_vm4, %v1006_v50  ;;  %v966_v33 = vsub.f32 %v767_v7, %v895_v1  ;;  %vm947_vm13 = vcmp.eq.f32.partialorder %v1915_v44, inf  ;;  %vm949_vm14 = vcmp.eq.f32.partialorder %v1915_v44, 0.0  ;;  %v950_v10 = vand.u32 2147483648, %v1915_v44 }
 0x1f5   :  { %v1232_v14 = vpop.eup %1231  ;;  %v946_v29 = vmul.f32 %v1230_v53, %v1915_v44  ;;  %vm898_vm15 = vcmp.eq.f32.partialorder %v1917_v20, inf  ;;  %vm900_vm0 = vcmp.eq.f32.partialorder %v1917_v20, 0.0  ;;  %v771_v12 = vsel %vm770_vm8, %v1891_v17, %v769_v5 }
 0x1f6   :  { %v983_v58 = vadd.f32 %v1659_v45, %v966_v33  ;;  %v897_v31 = vmul.f32 %v1232_v14, %v1917_v20  ;;  %v901_v18 = vand.u32 2147483648, %v1917_v20  ;;  %v823_v35 = vsel %vm821_vm7, %v822_v22, %v820_v55 }
 0x1f7   :  { %v1234_v25 = vpop.eup %1233  ;;  %v827_v38 = vsel %vm826_vm12, %v1895_v13, %v825_v8  ;;  %v948_v32 = vsel %vm947_vm13, %v1915_v44, %v946_v29  ;;  %vm954_vm1 = vcmp.eq.f32.partialorder %v1924_v26, inf  ;;  %v774_v30 = vsel %vm772_vm9, %v773_v2, %v771_v12 }
 0x1f8   :  { %v999_v36 = vmax.f32 %v983_v58, 0.0  ;;  %v951_v37 = vsel %vm949_vm14, %v950_v10, %v948_v32  ;;  %v899_v39 = vsel %vm898_vm15, %v1917_v20, %v897_v31  ;;  %v953_v40 = vmul.f32 %v1234_v25, %v1924_v26 }
 0x1f9   :  { %v974_v43 = vsub.f32 %v823_v35, %v951_v37  ;;  %v902_v11 = vsel %vm900_vm0, %v901_v18, %v899_v39  ;;  %v957_v46 = vand.u32 2147483648, %v1924_v26  ;;  %vm828_vm2 = vcmp.eq.f32.partialorder %v1895_v13, 0.0 }
 0x1fa   :  { %1016 = vst.msk [vmem:[%s2030_s7 + $0x30] sm:$0xff] %vm1009_vm4, %v999_v36  ;;  %v967_v15 = vsub.f32 %v774_v30, %v902_v11  ;;  %v955_v4 = vsel %vm954_vm1, %v1924_v26, %v953_v40  ;;  %vm956_vm3 = vcmp.eq.f32.partialorder %v1924_v26, 0.0  ;;  %v830_v17 = vsel %vm828_vm2, %v829_v24, %v827_v38 }
 0x1fb   :  { %v991_v41 = vadd.f32 %v1659_v45, %v974_v43  ;;  %v958_v16 = vsel %vm956_vm3, %v957_v46, %v955_v4 }
 0x1fc   :  { %v984_v44 = vadd.f32 %v1659_v45, %v967_v15  ;;  %v975_v20 = vsub.f32 %v830_v17, %v958_v16 }
 0x1fd   :  { %v1007_v23 = vmax.f32 %v991_v41, 0.0 }
 0x1fe   :  { %v1000_v9 = vmax.f32 %v984_v44, 0.0  ;;  %v992_v47 = vadd.f32 %v1659_v45, %v975_v20 }
 0x1ff   :  { %1024 = vst.msk [vmem:[%s2030_s7 + $0x70] sm:$0xff] %vm1009_vm4, %v1007_v23 }
 0x200   :  { %1017 = vst.msk [vmem:[%s2030_s7 + $0x38] sm:$0xff] %vm1009_vm4, %v1000_v9  ;;  %v1008_v13 = vmax.f32 %v992_v47, 0.0 }
 0x202   :  { %1025 = vst.msk [vmem:[%s2030_s7 + $0x78] sm:$0xff] %vm1009_vm4, %v1008_v13 }

</bundles_post_ra>
